<compile_context>
chip_gen: v7x
topology: tpu7x:2x2x1
jax: 0.10.0
libtpu: 0.0.40
codegen_flags: <defaults>
</compile_context>

<pallas_src>
import jax
import jax.numpy as jnp
from jax import lax
from jax.experimental import pallas as pl
from jax.experimental.pallas import tpu as pltpu


def _attn_kernel(key_ref, value_ref, w_ref, b_ref, out_ref):
    # key_ref:   (BB, T, Dt)   VMEM
    # value_ref: (BB, S, Dp)   VMEM
    # w_ref:     (Dt, Dp)      VMEM  (pre-transposed, pre-scaled by 1/sqrt(Dt))
    # b_ref:     (1, Dp)       VMEM  (pre-scaled by 1/sqrt(Dt))
    # out_ref:   (BB, T, Dp)   VMEM
    k = key_ref[...]                     # (BB, T, Dt)
    v = value_ref[...]                   # (BB, S, Dp)
    w = w_ref[...]                       # (Dt, Dp)
    bias = b_ref[...]                    # (1, Dp)

    # Projection: W is shared across the batch block, so this is a single
    # (BB*T, Dt) @ (Dt, Dp) MXU matmul (no transpose needed).
    k_proj = lax.dot_general(
        k, w,
        dimension_numbers=(((2,), (0,)), ((), ())),
        preferred_element_type=jnp.float32,
    ) + bias                             # (BB, T, Dp), scale already folded in

    # Scores: batched matmul contracting the feature dim of both operands
    # directly (no v.T / relayout), batch over the BB axis.  (BB, T, S)
    scores = lax.dot_general(
        k_proj.astype(v.dtype), v,
        dimension_numbers=(((2,), (2,)), ((0,), (0,))),
        preferred_element_type=jnp.float32,
    )

    # Numerically-stable softmax over S, math in f32.
    m = jnp.max(scores, axis=-1, keepdims=True)
    e = jnp.exp(scores - m)
    denom = jnp.sum(e, axis=-1, keepdims=True)
    probs = e * pl.reciprocal(denom, approx=True)

    # Weighted sum of values: batched (T, S) @ (S, Dp).  (BB, T, Dp)
    out = lax.dot_general(
        probs.astype(v.dtype), v,
        dimension_numbers=(((2,), (1,)), ((0,), (0,))),
        preferred_element_type=jnp.float32,
    )
    out_ref[...] = out.astype(out_ref.dtype)


def _pick_batch_block(B, T, S, Dt, Dp, itemsize, vmem_budget=8 * 1024 * 1024):
    """Largest divisor of B whose per-step VMEM footprint fits the budget."""
    # double-buffered input/output tiles + f32 intermediates per batch row
    per_row = (T * Dt + S * Dp + T * Dp) * itemsize * 2 + (T * S + 2 * T * Dp) * 4
    bb = max(1, min(B, vmem_budget // max(per_row, 1)))
    while B % bb:
        bb -= 1
    return bb


def scaled_dot_product_attention(key, value, w, b):
    """key: (B,T,Dt), value: (B,S,Dp), w: (Dp,Dt) torch layout, b: (Dp,).

    Returns (B, Dp) if T == 1 else (B, T, Dp), matching torch's .squeeze(1).
    """
    B, T, Dt = key.shape
    _, S, Dp = value.shape
    scale = 1.0 / float(jnp.sqrt(jnp.asarray(Dt, jnp.float32)))

    # Pre-transpose + fold the score scale into the projection params (wrapper-
    # side, one-time): (key @ W^T + b) * scale == key @ (W^T*scale) + b*scale.
    w_t = (w.T * scale).astype(key.dtype)          # (Dt, Dp)
    b_s = (b * scale).reshape(1, Dp).astype(jnp.float32)

    BB = _pick_batch_block(B, T, S, Dt, Dp, key.dtype.itemsize)

    out = pl.pallas_call(
        _attn_kernel,
        out_shape=jax.ShapeDtypeStruct((B, T, Dp), key.dtype),
        grid_spec=pltpu.PrefetchScalarGridSpec(
            num_scalar_prefetch=0,
            grid=(B // BB,),
            in_specs=[
                pl.BlockSpec((BB, T, Dt), lambda i: (i, 0, 0)),
                pl.BlockSpec((BB, S, Dp), lambda i: (i, 0, 0)),
                pl.BlockSpec((Dt, Dp), lambda i: (0, 0)),
                pl.BlockSpec((1, Dp), lambda i: (0, 0)),
            ],
            out_specs=pl.BlockSpec((BB, T, Dp), lambda i: (i, 0, 0)),
        ),
        compiler_params=pltpu.CompilerParams(
            dimension_semantics=("parallel",)),
    )(key, value, w_t, b_s)

    # torch .squeeze(1): only removes the axis if it is size 1
    if T == 1:
        out = jnp.squeeze(out, axis=1)
    return out


def reference(key, value, w, b):
    B, T, Dt = key.shape
    scale = 1.0 / jnp.sqrt(jnp.asarray(Dt, jnp.float32))
    kp = key @ w.T + b
    scores = jnp.einsum("btd,bsd->bts", kp, value) * scale
    probs = jax.nn.softmax(scores, axis=-1)
    out = jnp.einsum("bts,bsd->btd", probs, value)
    if T == 1:
        out = jnp.squeeze(out, axis=1)
    return out


if __name__ == "__main__":
    # cf.trg_params['hidden_size'] = 32, cf.src_params['hidden_size'] = 16
    B, T, S = 2, 1, 8
    D_trg = 32
    D_src = 16
    Dp = 2 * D_src  # 32

    root = jax.random.PRNGKey(0)
    k_key, k_val, k_w, k_b = jax.random.split(root, 4)

    key = jax.random.normal(k_key, (B, T, D_trg), dtype=jnp.float32)
    value = jax.random.normal(k_val, (B, S, Dp), dtype=jnp.float32)
    # Deterministic Linear params (torch layout: weight (out, in), bias (out,))
    w = jax.random.normal(k_w, (Dp, D_trg), dtype=jnp.float32) * 0.1
    b = jax.random.normal(k_b, (Dp,), dtype=jnp.float32) * 0.1

    out = scaled_dot_product_attention(key, value, w, b)
    out = jax.block_until_ready(out)

    ref = reference(key, value, w, b)
    assert out.shape == ref.shape, (out.shape, ref.shape)
    # Tolerance accounts for the approximate (EUP) reciprocal in the softmax
    # normalisation; everything else accumulates in f32.
    assert jnp.allclose(out, ref, atol=1e-3, rtol=1e-3), float(jnp.max(jnp.abs(out - ref)))

    print("KERNEL_OK")
</pallas_src>

<mosaic_0001>
module attributes {stable_mosaic.version = 11 : i64} {
  func.func @_attn_kernel(%arg0: i32, %arg1: memref<2x1x32xf32, #tpu.memory_space<vmem>>, %arg2: memref<2x8x32xf32, #tpu.memory_space<vmem>>, %arg3: memref<32x32xf32, #tpu.memory_space<vmem>>, %arg4: memref<1x32xf32, #tpu.memory_space<vmem>>, %arg5: memref<2x1x32xf32, #tpu.memory_space<vmem>>) attributes {dimension_semantics = [#tpu.dimension_semantics<parallel>], iteration_bounds = array<i64: 1>, scalar_prefetch = 0 : i64, scratch_operands = 0 : i64, tpu.core_type = #tpu.core_type<tc>, window_params = [{transform_indices = @transform_0, window_bounds = array<i64: 2, 1, 32>}, {transform_indices = @transform_1, window_bounds = array<i64: 2, 8, 32>}, {pipeline_mode = #tpu.pipeline_mode<synchronous>, transform_indices = @transform_2, window_bounds = array<i64: 32, 32>}, {pipeline_mode = #tpu.pipeline_mode<synchronous>, transform_indices = @transform_3, window_bounds = array<i64: 1, 32>}, {transform_indices = @transform_4, window_bounds = array<i64: 2, 1, 32>}]} {
    %c0 = arith.constant 0 : index
    %c0_0 = arith.constant 0 : index
    %c0_1 = arith.constant 0 : index
    %0 = vector.load %arg1[%c0, %c0_0, %c0_1] : memref<2x1x32xf32, #tpu.memory_space<vmem>>, vector<2x1x32xf32>
    %c0_2 = arith.constant 0 : index
    %c0_3 = arith.constant 0 : index
    %c0_4 = arith.constant 0 : index
    %1 = vector.load %arg2[%c0_2, %c0_3, %c0_4] : memref<2x8x32xf32, #tpu.memory_space<vmem>>, vector<2x8x32xf32>
    %c0_5 = arith.constant 0 : index
    %c0_6 = arith.constant 0 : index
    %2 = vector.load %arg3[%c0_5, %c0_6] : memref<32x32xf32, #tpu.memory_space<vmem>>, vector<32x32xf32>
    %c0_7 = arith.constant 0 : index
    %c0_8 = arith.constant 0 : index
    %3 = vector.load %arg4[%c0_7, %c0_8] : memref<1x32xf32, #tpu.memory_space<vmem>>, vector<1x32xf32>
    %cst = arith.constant dense<0.000000e+00> : vector<2x1x32xf32>
    %4 = tpu.matmul %0, %2, %cst {dimension_numbers = #tpu.dot_dimension_numbers<[2], [0], [0, 1], [1], [0, 0, 0, 1, 1, 1], [], []>} : vector<2x1x32xf32>, vector<32x32xf32>, vector<2x1x32xf32> -> vector<2x1x32xf32>
    %5 = vector.shape_cast %3 : vector<1x32xf32> to vector<1x1x32xf32>
    %6 = vector.broadcast %5 : vector<1x1x32xf32> to vector<2x1x32xf32>
    %7 = arith.addf %4, %6 : vector<2x1x32xf32>
    %cst_9 = arith.constant dense<0.000000e+00> : vector<2x1x8xf32>
    %8 = tpu.matmul %7, %1, %cst_9 {dimension_numbers = #tpu.dot_dimension_numbers<[2], [2], [1], [1], [0, 0, 0, 1, 1, 1], [0], [0]>} : vector<2x1x32xf32>, vector<2x8x32xf32>, vector<2x1x8xf32> -> vector<2x1x8xf32>
    %cst_10 = arith.constant dense<0xFF800000> : vector<2x1xf32>
    %9 = vector.multi_reduction <maximumf>, %8, %cst_10 [2] : vector<2x1x8xf32> to vector<2x1xf32>
    %10 = vector.shape_cast %9 : vector<2x1xf32> to vector<2x1x1xf32>
    %11 = vector.broadcast %10 : vector<2x1x1xf32> to vector<2x1x8xf32>
    %12 = arith.subf %8, %11 : vector<2x1x8xf32>
    %13 = math.exp %12 : vector<2x1x8xf32>
    %cst_11 = arith.constant dense<0.000000e+00> : vector<2x1xf32>
    %14 = vector.multi_reduction <add>, %13, %cst_11 [2] : vector<2x1x8xf32> to vector<2x1xf32>
    %15 = vector.shape_cast %14 : vector<2x1xf32> to vector<2x1x1xf32>
    %16 = tpu.reciprocal %15 {approx = true} : vector<2x1x1xf32> -> vector<2x1x1xf32>
    %17 = vector.broadcast %16 : vector<2x1x1xf32> to vector<2x1x8xf32>
    %18 = arith.mulf %13, %17 : vector<2x1x8xf32>
    %cst_12 = arith.constant dense<0.000000e+00> : vector<2x1x32xf32>
    %19 = tpu.matmul %18, %1, %cst_12 {dimension_numbers = #tpu.dot_dimension_numbers<[2], [1], [1], [2], [0, 0, 0, 1, 1, 2], [0], [0]>} : vector<2x1x8xf32>, vector<2x8x32xf32>, vector<2x1x32xf32> -> vector<2x1x32xf32>
    %c0_13 = arith.constant 0 : index
    %c0_14 = arith.constant 0 : index
    %c0_15 = arith.constant 0 : index
    %20 = vector.load %arg5[%c0_13, %c0_14, %c0_15] : memref<2x1x32xf32, #tpu.memory_space<vmem>>, vector<2x1x32xf32>
    tpu.vector_store %arg5[%c0_13, %c0_14, %c0_15], %19 {strides = array<i32>} : memref<2x1x32xf32, #tpu.memory_space<vmem>>, vector<2x1x32xf32>,
    return
  }
  func.func @transform_0(%arg0: i32) -> (i32, i32, i32) {
    %c0_i32 = arith.constant 0 : i32
    %c0_i32_0 = arith.constant 0 : i32
    %c0_i32_1 = arith.constant 0 : i32
    return %arg0, %c0_i32, %c0_i32_0 : i32, i32, i32
  }
  func.func @transform_1(%arg0: i32) -> (i32, i32, i32) {
    %c0_i32 = arith.constant 0 : i32
    %c0_i32_0 = arith.constant 0 : i32
    %c0_i32_1 = arith.constant 0 : i32
    return %arg0, %c0_i32, %c0_i32_0 : i32, i32, i32
  }
  func.func @transform_2(%arg0: i32) -> (i32, i32) {
    %c0_i32 = arith.constant 0 : i32
    %c0_i32_0 = arith.constant 0 : i32
    %c0_i32_1 = arith.constant 0 : i32
    return %c0_i32, %c0_i32_0 : i32, i32
  }
  func.func @transform_3(%arg0: i32) -> (i32, i32) {
    %c0_i32 = arith.constant 0 : i32
    %c0_i32_0 = arith.constant 0 : i32
    %c0_i32_1 = arith.constant 0 : i32
    return %c0_i32, %c0_i32_0 : i32, i32
  }
  func.func @transform_4(%arg0: i32) -> (i32, i32, i32) {
    %c0_i32 = arith.constant 0 : i32
    %c0_i32_0 = arith.constant 0 : i32
    %c0_i32_1 = arith.constant 0 : i32
    return %arg0, %c0_i32, %c0_i32_0 : i32, i32, i32
  }
}

</mosaic_0001>

<bundles_post_ra>
// kernel: tpu_custom_call.1
= control target key start
LH: loop header
LB: loop body
LE: loop exit
PB: predicated region body
PF: predicated region fallthrough
CT: control target
= control target key end

     0   :  { %9 = vsyncpa [#allocation3], 0  ;;  %s825_s0 = inlined_call_operand.hbm [shape: f32[2,1,32], index: 0, kind: input, shape index: {}]   ;;  %s826_s1 = inlined_call_operand.hbm [shape: f32[2,8,32], index: 1, kind: input, shape index: {}]   ;;  %s827_s2 = inlined_call_operand.hbm [shape: f32[32,32], index: 2, kind: input, shape index: {}]   ;;  %s828_s3 = inlined_call_operand.vmem [shape: f32[1,32], index: 3, kind: input, shape index: {}]   ;;  %s829_s4 = inlined_call_operand.hbm [shape: f32[2,1,32], index: 4, kind: output, shape index: {}]  }
   0x1   :  { %10 = vsyncpa [#allocation6], 0 }
   0x2   :  { %11 = vsyncpa [#allocation4], 0  ;;  %s711_s15 = smov [#allocation5]   ;;  %s617_s19 = scalar_lea.hbm %s826_s1, 256 }
   0x3   :  { %s29_s16 = sshll.u32 %s711_s15, 4  ;;  %p618_p0 = scmp.ne.s32.totalorder %s826_s1, %s617_s19  ;;  %s30_s16 = int_to_ptr.vmem [resolvable:$true] %s29_s16 }
   0x4   :  { %p621_p1 = scmp.lt.u32.totalorder %s617_s19, %s826_s1 }
   0x6   :  { %p623_p2 = pnand %p621_p1, %p618_p0 }
   0x8   :  { %626 = shalt.err (!%p623_p2)
}
   0x9   :  { %s627_s24 = scalar_lea.vmem %s30_s16, 256  ;;  %p632_p4 = scmp.lt.s32.totalorder %s30_s16, %s30_s16 }
   0xa   :  { %p628_p3 = scmp.ne.s32.totalorder %s30_s16, %s627_s24  ;;  %p633_p5 = scmp.lt.s32.totalorder %s627_s24, %s627_s24 }
   0xc   :  { %p634_p6 = por %p633_p5, %p632_p4 }
   0xe   :  { %p635_p7 = pnand %p634_p6, %p628_p3 }
  0x10   :  { %638 = shalt.err (!%p635_p7)
}
  0x11   :  { %s712_s25 = smov 128   ;;  %s713_s26 = smov 8  }
  0x12   :  { %35 = dma.hbm_to_vmem [thread:$0]  %s826_s1, 256, %s30_s16, [#allocation6], %s712_s25, %s712_s25, %s713_s26  }
  0x13   :  { %s714_s29 = smov [#allocation2]   ;;  %s639_s7 = scalar_lea.hbm %s825_s0, 32 }
  0x14   :  { %s17_s30 = sshll.u32 %s714_s29, 4  ;;  %p640_p8 = scmp.ne.s32.totalorder %s825_s0, %s639_s7  ;;  %s18_s30 = int_to_ptr.vmem [resolvable:$true] %s17_s30 }
  0x15   :  { %p643_p9 = scmp.lt.u32.totalorder %s639_s7, %s825_s0 }
  0x17   :  { %p645_p10 = pnand %p643_p9, %p640_p8 }
  0x19   :  { %648 = shalt.err (!%p645_p10)
}
  0x1a   :  { %s649_s12 = scalar_lea.vmem %s18_s30, 32  ;;  %p654_p12 = scmp.lt.s32.totalorder %s18_s30, %s18_s30 }
  0x1b   :  { %p650_p11 = scmp.ne.s32.totalorder %s18_s30, %s649_s12  ;;  %p655_p13 = scmp.lt.s32.totalorder %s649_s12, %s649_s12 }
  0x1d   :  { %p656_p0 = por %p655_p13, %p654_p12 }
  0x1f   :  { %p657_p1 = pnand %p656_p0, %p650_p11 }
  0x21   :  { %660 = shalt.err (!%p657_p1)
}
  0x22   :  { %s715_s1 = smov 16   ;;  %s716_s13 = smov 1  }
  0x23   :  { %23 = dma.hbm_to_vmem [thread:$0]  %s825_s0, 32, %s18_s30, [#allocation3], %s715_s1, %s715_s1, %s716_s13  }
  0x24   :  { %s717_s16 = smov [#allocation7]   ;;  %s661_s20 = scalar_lea.hbm %s827_s2, 512 }
  0x25   :  { %s41_s17 = sshll.u32 %s717_s16, 4  ;;  %p662_p2 = scmp.ne.s32.totalorder %s827_s2, %s661_s20  ;;  %s42_s17 = int_to_ptr.vmem [resolvable:$true] %s41_s17 }
  0x26   :  { %p665_p3 = scmp.lt.u32.totalorder %s661_s20, %s827_s2 }
  0x28   :  { %p667_p4 = pnand %p665_p3, %p662_p2 }
  0x2a   :  { %670 = shalt.err (!%p667_p4)
}
  0x2b   :  { %s671_s27 = scalar_lea.vmem %s42_s17, 512  ;;  %p676_p6 = scmp.lt.s32.totalorder %s42_s17, %s42_s17 }
  0x2c   :  { %p672_p5 = scmp.ne.s32.totalorder %s42_s17, %s671_s27  ;;  %p677_p7 = scmp.lt.s32.totalorder %s671_s27, %s671_s27 }
  0x2e   :  { %p678_p8 = por %p677_p7, %p676_p6 }
  0x30   :  { %p679_p9 = pnand %p678_p8, %p672_p5 }
  0x32   :  { %682 = shalt.err (!%p679_p9)
}
  0x33   :  { %47 = dma.hbm_to_vmem [thread:$0]  %s827_s2, 512, %s42_s17, [#allocation6], %s712_s25, %s712_s25, %s713_s26  }
  0x34   :  { %705 = dma.done.wait [#allocation3], 32  }
  0x35   :  { %706 = vsyncadd [#allocation3], 4294967264 }
  0x36   :  { %707 = dma.done.wait [#allocation6], 768  }
  0x37   :  { %708 = vsyncadd [#allocation6], 4294966528  ;;  %v74_v0 = vlaneseq  ;;  %v718_v1 = vmov 0.0|0.0   ;;  %vm719_vm0 = vmmov 0   ;;  %v720_v2 = vmov 0.0   ;;  %v63_v7 = vld [vmem:[#allocation7] sm:$0xff] }
  0x38   :  { %590 = vmatprep.subr.bf16.mxu0 %v718_v1  ;;  %567 = vmatprep.mubr.msk.f32.mxu0 %vm719_vm0, %v720_v2  ;;  %v721_v3 = vmov 1966171168   ;;  %v64_v8 = vld [vmem:[#allocation7 + $0x8] sm:$0xff]  ;;  %v65_v9 = vld [vmem:[#allocation7 + $0x10] sm:$0xff]  ;;  %v66_v12 = vld [vmem:[#allocation7 + $0x18] sm:$0xff]  ;;  %vm102_vm1 = vcmask 261120  }
  0x39   :  { %v72_v4 = vunpack.c.l.s4 %v721_v3  ;;  %570 = vmatprep.subr.mxu1 %v720_v2  ;;  %572 = vmatprep.mubr.msk.f32.mxu1 %vm719_vm0, %v720_v2  ;;  %v75_v5 = vshrl.u32 %v74_v0, 7  ;;  %v591_v11 = vpack.c.bf16 %v64_v8, %v63_v7  ;;  %v59_v13 = vld [vmem:[#allocation2] sm:$0x1]  ;;  %v60_v14 = vld [vmem:[#allocation2 + $0x1] sm:$0x1]  ;;  %v594_v16 = vpack.c.bf16 %v66_v12, %v65_v9  ;;  %v61_v19 = vld [vmem:[#allocation5] sm:$0xff] }
  0x3a   :  { %v70_v15 = vcombine.low %v59_v13, %v60_v14  ;;  %571 = vmatpush3.xpose.msk.msra.mxu1 %vm102_vm1, %v61_v19  ;;  %v608_v20 = vld [vmem:[%s828_s3] ss:$0 sps:$4 sm:$0x11]   ;;  %v62_v29 = vld [vmem:[#allocation5 + $0x8] sm:$0xff]  ;;  %vm348_vm2 = vcmask 57344   ;;  %vm371_vm3 = vcmask 64512  }
  0x3b   :  { %v73_v6 = vunpack.c.0.s8 %v72_v4  ;;  %592 = vmatpush3.bf16.msra.mxu0 %v591_v11  ;;  %575 = vmatprep.subr.mxu1 %v720_v2  ;;  %vm518_vm4 = vcmask 253952   ;;  %s722_s3 = smov [#allocation8]  }
  0x3c   :  { %593 = vmatprep.subr.bf16.mxu0 %v718_v1  ;;  %s526_s26 = sshll.u32 %s722_s3, 4  ;;  %s527_s26 = int_to_ptr.vmem [resolvable:$true] %s526_s26 }
  0x3d   :  { %v76_v10 = vsub.s32 %v73_v6, %v75_v5  ;;  %s683_s29 = scalar_lea.vmem %s527_s26, 32  ;;  %p688_p11 = scmp.lt.s32.totalorder %s527_s26, %s527_s26 }
  0x3e   :  { %p684_p10 = scmp.ne.s32.totalorder %s527_s26, %s683_s29  ;;  %p689_p12 = scmp.lt.s32.totalorder %s683_s29, %s683_s29 }
  0x3f   :  { %v77_v17 = vrot.slane %v70_v15, %v76_v10  ;;  %595 = vmatpush3.bf16.msra.mxu0 %v594_v16  ;;  %v93_v21 = vrot.slane %v608_v20, %v76_v10 }
  0x40   :  { %580 = vmatprep.subr.mxu0 %v720_v2  ;;  %p690_p13 = por %p689_p12, %p688_p11 }
  0x41   :  { %v84_v18 = vrot.slane %v77_v17, %v76_v10  ;;  %v100_v22 = vrot.slane %v93_v21, %v76_v10 }
  0x42   :  { %p691_p0 = pnand %p690_p13, %p684_p10 }
  0x43   :  { %568 = vmatmul.mubr.msk.f32.vlgmr.msra.gmra.mrb[0].mxu0 %vm102_vm1, %v84_v18 }
  0x44   :  { %582 = vmatprep.mubr.msk.f32.mxu0 %vm719_vm0, %v720_v2  ;;  %581 = vmatpush3.msra.mxu0 %v61_v19 }
 0x116   :  { %v171_v23 = vpop.f32.mrb[0].mxu0 }
 0x117   :  { %v172_v24 = vadd.f32 %v171_v23, %v100_v22  ;;  %v569_v25 = vpop.f32.mrb[1].mxu0 }
 0x119   :  { %v182_v26 = vrot.slane %v172_v24, %v76_v10 }
 0x11b   :  { %v183_v27 = vcombine.high %v182_v26, %v182_v26  ;;  %v190_v28 = vrot.slane %v182_v26, %v76_v10 }
 0x11d   :  { %573 = vmatmul.mubr.msk.f32.vlgmr.msra.gmra.mrb[0].mxu1 %vm102_vm1, %v190_v28  ;;  %v197_v30 = vrot.slane %v183_v27, %v76_v10 }
 0x11e   :  { %576 = vmatpush3.xpose.msk.msra.mxu1 %vm102_vm1, %v62_v29  ;;  %577 = vmatprep.mubr.msk.f32.mxu1 %vm719_vm0, %v720_v2 }
 0x11f   :  { %585 = vmatprep.subr.mxu1 %v720_v2 }
 0x121   :  { %578 = vmatmul.mubr.msk.f32.vlgmr.msra.gmra.mrb[2].mxu1 %vm102_vm1, %v197_v30 }
 0x122   :  { %586 = vmatpush3.msra.mxu1 %v62_v29  ;;  %587 = vmatprep.mubr.msk.f32.mxu1 %vm719_vm0, %v720_v2 }
 0x1f0   :  { %v269_v31 = vpop.f32.mrb[0].mxu1 }
 0x1f1   :  { %v574_v32 = vpop.f32.mrb[1].mxu1  ;;  %v349_v33 = vsel %vm348_vm2, %v269_v31, -inf }
 0x1f2   :  { %350 = vmax.xlane.f32.xlu0 %v349_v33 }
 0x1f4   :  { %v344_v34 = vpop.f32.mrb[2].mxu1 }
 0x1f5   :  { %v579_v35 = vpop.f32.mrb[3].mxu1  ;;  %v352_v36 = vsel %vm348_vm2, %v344_v34, -inf }
 0x1f6   :  { %353 = vmax.xlane.f32.xlu0 %v352_v36 }
 0x27f   :  { %v351_v37 = vpop.xlane.xlu0 %350 }
 0x280   :  { %v355_v38 = vsub.f32 %v269_v31, %v351_v37 }
 0x282   :  { %v357_v39 = vmul.f32 1.442695, %v355_v38 }
 0x283   :  { %v354_v40 = vpop.xlane.xlu0 %353 }
 0x284   :  { %609 = vpow2.f32 %v357_v39  ;;  %v356_v41 = vsub.f32 %v344_v34, %v354_v40 }
 0x286   :  { %v359_v42 = vmul.f32 1.442695, %v356_v41 }
 0x288   :  { %611 = vpow2.f32 %v359_v42 }
 0x28e   :  { %v610_v43 = vpop.eup %609 }
 0x28f   :  { %v361_v44 = vsel %vm348_vm2, %v610_v43, 0.0 }
 0x290   :  { %362 = vadd.xlane.f32.xlu1 %v361_v44 }
 0x292   :  { %v612_v45 = vpop.eup %611 }
 0x293   :  { %v364_v46 = vsel %vm348_vm2, %v612_v45, 0.0 }
 0x294   :  { %365 = vadd.xlane.f32.xlu1 %v364_v46 }
 0x31d   :  { %v363_v47 = vpop.xlane.xlu1 %362 }
 0x31e   :  { %613 = vrcp.f32 %v363_v47 }
 0x321   :  { %v366_v48 = vpop.xlane.xlu1 %365 }
 0x322   :  { %615 = vrcp.f32 %v366_v48 }
 0x328   :  { %v614_v49 = vpop.eup %613 }
 0x329   :  { %v369_v50 = vmul.f32 %v614_v49, %v610_v43 }
 0x32b   :  { %583 = vmatmul.mubr.msk.f32.vlgmr.msra.gmra.mrb[2].mxu0 %vm371_vm3, %v369_v50 }
 0x32c   :  { %v616_v51 = vpop.eup %615 }
 0x32d   :  { %v370_v52 = vmul.f32 %v616_v51, %v612_v45 }
 0x32f   :  { %588 = vmatmul.mubr.msk.f32.vlgmr.msra.gmra.mrb[4].mxu1 %vm371_vm3, %v370_v52 }
 0x3fe   :  { %v441_v53 = vpop.f32.mrb[2].mxu0 }
 0x3ff   :  { %519 = vst.msk [vmem:[#allocation8] sm:$0x1] %vm518_vm4, %v441_v53  ;;  %v584_v54 = vpop.f32.mrb[3].mxu0 }
 0x402   :  { %v514_v55 = vpop.f32.mrb[4].mxu1 }
 0x403   :  { %520 = vst.msk [vmem:[#allocation8 + $0x1] sm:$0x1] %vm518_vm4, %v514_v55  ;;  %v589_v56 = vpop.f32.mrb[5].mxu1 }
 0x404   :  { %694 = shalt.err (!%p691_p0)
}
 0x405   :  { %s695_s6 = scalar_lea.hbm %s829_s4, 32 }
 0x406   :  { %p696_p1 = scmp.ne.s32.totalorder %s829_s4, %s695_s6  ;;  %p699_p2 = scmp.lt.u32.totalorder %s695_s6, %s829_s4 }
 0x408   :  { %p701_p3 = pnand %p699_p2, %p696_p1 }
 0x40a   :  { %704 = shalt.err (!%p701_p3)
}
 0x40b   :  { %532 = dma.vmem_to_hbm [thread:$0]  %s527_s26, 32, %s829_s4, [#allocation4], %s715_s1, %s715_s1, %s716_s13  }
 0x40c   :  { %709 = dma.done.wait [#allocation4], 32  }
 0x40d   :  { %710 = vsyncadd [#allocation4], 4294967264 }
 0x40e   :  { %536 = vsyncpa [#allocation3], 1 }
 0x40f   :  { %537 = vsyncpa [#allocation6], 1 }
 0x410   :  { %538 = vsyncpa [#allocation4], 1 }

</bundles_post_ra>
